<compile_context>
chip_gen: v7x
topology: tpu7x:2x2x1
jax: 0.10.0
libtpu: 0.0.40
codegen_flags: <defaults>
</compile_context>

<pallas_src>
import jax
import jax.numpy as jnp
from jax import lax
from jax.experimental import pallas as pl
from jax.experimental.pallas import tpu as pltpu


def _sigmoid(v):
    # exp() and the approximate reciprocal both issue on the EUP slot,
    # keeping the whole sigmoid off the VALU.
    return pl.reciprocal(1.0 + jnp.exp(-v), approx=True)


# --------------------------------------------------------------------------
# Fully fused kernel: projections / gather / gate / scatter-add / batchnorm /
# SiLU / residual — everything resident in VMEM for one grid step.
# --------------------------------------------------------------------------
def _egg_kernel(node_ref, edge_ref,
                w_node_ref, w_edge_ref, pblk_ref,
                idx_col_ref, idx_i_row_ref,
                x_out_ref, y_out_ref,
                cat_ref):
    N, F = node_ref.shape
    E = edge_ref.shape[0]

    # ---- Unpack the single [8, 4F] parameter block (one DMA for 6 row params).
    pblk = pblk_ref[...]
    b_node = pblk[0:1, :]            # packed biases [1, 4F]
    b_edge = pblk[1:2, 0:F]          # edge_gate bias
    gn = pblk[2:3, 0:F]              # bn_nodes gamma
    bn = pblk[3:4, 0:F]              # bn_nodes beta
    ge = pblk[4:5, 0:F]              # bn_edges gamma
    be = pblk[5:6, 0:F]              # bn_edges beta

    # ---- Fused projections on the MXU (no HBM round trips for intermediates).
    # node_proj columns: [ src_gate | dst_gate | src_update | dst_update ]  -> [N, 4F]
    node_proj = jnp.dot(node_ref[...], w_node_ref[...],
                        preferred_element_type=jnp.float32) + b_node
    eg = jnp.dot(edge_ref[...], w_edge_ref[...],
                 preferred_element_type=jnp.float32) + b_edge                 # [E, F]

    # ---- Single stacked gather: one [2E, N] one-hot (iota compare, pure VPU)
    # feeding ONE MXU dot whose RHS (node_proj) is shared by both indices.
    iota_2e_n = lax.broadcasted_iota(jnp.int32, (2 * E, N), 1)
    onehot_ij = (idx_col_ref[...] == iota_2e_n).astype(jnp.float32)           # [2E, N]
    gath = jnp.dot(onehot_ij, node_proj, preferred_element_type=jnp.float32)  # [2E, 4F]
    gath_i = gath[:E]        # rows gathered with idx_i
    gath_j = gath[E:]        # rows gathered with idx_j

    e_src = gath_i[:, 0 * F:1 * F]   # src_gate(node)[idx_i]
    e_dst = gath_j[:, 1 * F:2 * F]   # dst_gate(node)[idx_j]
    bh    = gath_j[:, 3 * F:4 * F]   # dst_update(node)[idx_j]

    y = e_src + e_dst + eg           # [E, F]
    sigma = _sigmoid(y)
    m = bh * sigma

    # ---- Fused scatter_add: write m / sigma into lane offsets of a VMEM scratch
    # (no lane concatenate), then one [N,E] x [E,2F] matmul does both reductions.
    cat_ref[:, 0:F] = m
    cat_ref[:, F:2 * F] = sigma
    iota_ne = lax.broadcasted_iota(jnp.int32, (N, E), 0)
    onehot_iT = (iota_ne == idx_i_row_ref[...]).astype(jnp.float32)           # [N, E]
    scat = jnp.dot(onehot_iT, cat_ref[...], preferred_element_type=jnp.float32)  # [N, 2F]
    sum_sigma_h = scat[:, :F]
    sum_sigma = scat[:, F:]

    # Exact divide for the error-sensitive ratio of two accumulated sums.
    h = sum_sigma_h / (sum_sigma + 1e-6)
    x = node_proj[:, 2 * F:3 * F] + h          # src_update(node) + h

    # ---- BatchNorm1d (training-mode batch statistics, eps=1e-5) + SiLU (VPU/EUP).
    def bn_silu(v, gamma, beta):
        mean = jnp.mean(v, axis=0, keepdims=True)
        var = jnp.mean(jnp.square(v - mean), axis=0, keepdims=True)
        vn = (v - mean) * lax.rsqrt(var + 1e-5)
        vn = vn * gamma + beta
        return vn * _sigmoid(vn)

    # ---- Residual connections (outputs alias the node/edge input buffers).
    x_out_ref[...] = (node_ref[...] + bn_silu(x, gn, bn)).astype(x_out_ref.dtype)
    y_out_ref[...] = (edge_ref[...] + bn_silu(y, ge, be)).astype(y_out_ref.dtype)


# --------------------------------------------------------------------------
# One-time parameter packing (do this at init time, NOT per forward).
# --------------------------------------------------------------------------
def pack_params(params):
    F = params["w_src_gate"].shape[0]
    w_node = jnp.concatenate([params["w_src_gate"], params["w_dst_gate"],
                              params["w_src_update"], params["w_dst_update"]], axis=1)
    b_node = jnp.concatenate([params["b_src_gate"], params["b_dst_gate"],
                              params["b_src_update"], params["b_dst_update"]], axis=1)

    def row(v):                       # pad a [1, F] row out to [1, 4F]
        return jnp.pad(v.astype(jnp.float32), ((0, 0), (0, 3 * F)))

    pblk = jnp.concatenate([
        b_node.astype(jnp.float32),
        row(params["b_edge_gate"]),
        row(params["bn_nodes_gamma"]),
        row(params["bn_nodes_beta"]),
        row(params["bn_edges_gamma"]),
        row(params["bn_edges_beta"]),
        jnp.zeros((2, 4 * F), jnp.float32),
    ], axis=0)                        # [8, 4F]

    return {"w_node": w_node,
            "w_edge_gate": params["w_edge_gate"],
            "pblk": pblk}


# --------------------------------------------------------------------------
# Wrapper: EdgeGatedGraphConv forward (one pallas_call)
# --------------------------------------------------------------------------
def edge_gated_graph_conv(node_feats, edge_feats, edge_index, packed):
    N, F = node_feats.shape
    E = edge_feats.shape[0]

    idx_i = edge_index[0].astype(jnp.int32)
    idx_j = edge_index[1].astype(jnp.int32)
    # Column layout (stacked) for the gather one-hot, lane-dense row layout for the
    # scatter one-hot (avoids any in-kernel relayout of the indices).
    idx_col = jnp.concatenate([idx_i, idx_j]).reshape(2 * E, 1)
    idx_i_row = idx_i.reshape(1, E)

    def full(shape):
        zeros = (0,) * len(shape)
        return pl.BlockSpec(shape, lambda i: zeros)

    x_out, y_out = pl.pallas_call(
        _egg_kernel,
        out_shape=(jax.ShapeDtypeStruct((N, F), node_feats.dtype),
                   jax.ShapeDtypeStruct((E, F), edge_feats.dtype)),
        grid_spec=pltpu.PrefetchScalarGridSpec(
            num_scalar_prefetch=0,
            grid=(1,),
            in_specs=[full((N, F)), full((E, F)),
                      full((F, 4 * F)), full((F, F)), full((8, 4 * F)),
                      full((2 * E, 1)), full((1, E))],
            out_specs=[full((N, F)), full((E, F))],
            scratch_shapes=[pltpu.VMEM((E, 2 * F), jnp.float32)],
        ),
        input_output_aliases={0: 0, 1: 1},      # node->x_out, edge->y_out residuals
        compiler_params=pltpu.CompilerParams(
            dimension_semantics=("arbitrary",)),
    )(node_feats, edge_feats,
      packed["w_node"], packed["w_edge_gate"], packed["pblk"],
      idx_col, idx_i_row)
    return x_out, y_out


# --------------------------------------------------------------------------
# Pure-JAX reference (for the correctness check)
# --------------------------------------------------------------------------
def reference(node_feats, edge_feats, edge_index, params):
    def lin(x, w, b):
        return x @ w + b

    idx_i, idx_j = edge_index
    N, F = node_feats.shape
    e_src = lin(node_feats, params["w_src_gate"], params["b_src_gate"])[idx_i]
    e_dst = lin(node_feats, params["w_dst_gate"], params["b_dst_gate"])[idx_j]
    y = e_src + e_dst + lin(edge_feats, params["w_edge_gate"], params["b_edge_gate"])
    sigma = jax.nn.sigmoid(y)
    bh = lin(node_feats, params["w_dst_update"], params["b_dst_update"])[idx_j]
    m = bh * sigma
    sum_sigma_h = jnp.zeros((N, F)).at[idx_i].add(m)
    sum_sigma = jnp.zeros((N, F)).at[idx_i].add(sigma)
    h = sum_sigma_h / (sum_sigma + 1e-6)
    x = lin(node_feats, params["w_src_update"], params["b_src_update"]) + h

    def bn_silu(v, g, b):
        mean = v.mean(0, keepdims=True)
        var = ((v - mean) ** 2).mean(0, keepdims=True)
        vn = (v - mean) / jnp.sqrt(var + 1e-5) * g + b
        return vn * jax.nn.sigmoid(vn)

    x = node_feats + bn_silu(x, params["bn_nodes_gamma"], params["bn_nodes_beta"])
    y = edge_feats + bn_silu(y, params["bn_edges_gamma"], params["bn_edges_beta"])
    return x, y


# --------------------------------------------------------------------------
if __name__ == "__main__":
    F_IN = F_OUT = 32        # residual requires input_features == output_features
    N_NODES = 16
    N_EDGES = 48

    key = jax.random.PRNGKey(0)
    ks = jax.random.split(key, 16)

    def w(k):
        return jax.random.normal(k, (F_IN, F_OUT), jnp.float32) * 0.1

    def b(k):
        return jax.random.normal(k, (1, F_OUT), jnp.float32) * 0.1

    params = {
        "w_src_gate": w(ks[0]), "b_src_gate": b(ks[1]),
        "w_dst_gate": w(ks[2]), "b_dst_gate": b(ks[3]),
        "w_edge_gate": w(ks[4]), "b_edge_gate": b(ks[5]),
        "w_src_update": w(ks[6]), "b_src_update": b(ks[7]),
        "w_dst_update": w(ks[8]), "b_dst_update": b(ks[9]),
        "bn_nodes_gamma": 1.0 + 0.1 * jax.random.normal(ks[10], (1, F_OUT), jnp.float32),
        "bn_nodes_beta": 0.1 * jax.random.normal(ks[11], (1, F_OUT), jnp.float32),
        "bn_edges_gamma": 1.0 + 0.1 * jax.random.normal(ks[12], (1, F_OUT), jnp.float32),
        "bn_edges_beta": 0.1 * jax.random.normal(ks[13], (1, F_OUT), jnp.float32),
    }

    node_feats = jax.random.normal(ks[14], (N_NODES, F_IN), jnp.float32)
    edge_feats = jax.random.normal(ks[15], (N_EDGES, F_IN), jnp.float32)
    edge_index = jax.random.randint(jax.random.PRNGKey(7), (2, N_EDGES), 0, N_NODES,
                                    dtype=jnp.int32)

    # Reference first (plays nicely with the aliased/donated kernel inputs).
    x_ref, y_ref = reference(node_feats, edge_feats, edge_index, params)

    packed = pack_params(params)      # one-time packing, hoisted out of the forward
    x_out, y_out = edge_gated_graph_conv(node_feats, edge_feats, edge_index, packed)
    jax.block_until_ready((x_out, y_out))

    # Tolerance reflects the approximate EUP reciprocal inside sigmoid.
    assert jnp.allclose(x_out, x_ref, atol=5e-3, rtol=5e-3), "node output mismatch"
    assert jnp.allclose(y_out, y_ref, atol=5e-3, rtol=5e-3), "edge output mismatch"

    print("KERNEL_OK")
</pallas_src>

<mosaic_0001>
module attributes {stable_mosaic.version = 11 : i64} {
  func.func @_egg_kernel(%arg0: i32, %arg1: memref<16x32xf32, #tpu.memory_space<vmem>>, %arg2: memref<48x32xf32, #tpu.memory_space<vmem>>, %arg3: memref<32x128xf32, #tpu.memory_space<vmem>>, %arg4: memref<32x32xf32, #tpu.memory_space<vmem>>, %arg5: memref<8x128xf32, #tpu.memory_space<vmem>>, %arg6: memref<96x1xi32, #tpu.memory_space<vmem>>, %arg7: memref<1x48xi32, #tpu.memory_space<vmem>>, %arg8: memref<16x32xf32, #tpu.memory_space<vmem>>, %arg9: memref<48x32xf32, #tpu.memory_space<vmem>>, %arg10: memref<48x64xf32, #tpu.memory_space<vmem>>) attributes {dimension_semantics = [#tpu.dimension_semantics<arbitrary>], iteration_bounds = array<i64: 1>, scalar_prefetch = 0 : i64, scratch_operands = 1 : i64, tpu.core_type = #tpu.core_type<tc>, window_params = [{pipeline_mode = #tpu.pipeline_mode<synchronous>, transform_indices = @transform_0, window_bounds = array<i64: 16, 32>}, {pipeline_mode = #tpu.pipeline_mode<synchronous>, transform_indices = @transform_1, window_bounds = array<i64: 48, 32>}, {pipeline_mode = #tpu.pipeline_mode<synchronous>, transform_indices = @transform_2, window_bounds = array<i64: 32, 128>}, {pipeline_mode = #tpu.pipeline_mode<synchronous>, transform_indices = @transform_3, window_bounds = array<i64: 32, 32>}, {pipeline_mode = #tpu.pipeline_mode<synchronous>, transform_indices = @transform_4, window_bounds = array<i64: 8, 128>}, {pipeline_mode = #tpu.pipeline_mode<synchronous>, transform_indices = @transform_5, window_bounds = array<i64: 96, 1>}, {pipeline_mode = #tpu.pipeline_mode<synchronous>, transform_indices = @transform_6, window_bounds = array<i64: 1, 48>}, {pipeline_mode = #tpu.pipeline_mode<synchronous>, transform_indices = @transform_7, window_bounds = array<i64: 16, 32>}, {pipeline_mode = #tpu.pipeline_mode<synchronous>, transform_indices = @transform_8, window_bounds = array<i64: 48, 32>}]} {
    %c0 = arith.constant 0 : index
    %c0_0 = arith.constant 0 : index
    %0 = vector.load %arg5[%c0, %c0_0] : memref<8x128xf32, #tpu.memory_space<vmem>>, vector<8x128xf32>
    %1 = vector.extract_strided_slice %0 {offsets = [0, 0], sizes = [1, 128], strides = [1, 1]} : vector<8x128xf32> to vector<1x128xf32>
    %2 = vector.extract_strided_slice %0 {offsets = [1, 0], sizes = [1, 32], strides = [1, 1]} : vector<8x128xf32> to vector<1x32xf32>
    %3 = vector.extract_strided_slice %0 {offsets = [2, 0], sizes = [1, 32], strides = [1, 1]} : vector<8x128xf32> to vector<1x32xf32>
    %4 = vector.extract_strided_slice %0 {offsets = [3, 0], sizes = [1, 32], strides = [1, 1]} : vector<8x128xf32> to vector<1x32xf32>
    %5 = vector.extract_strided_slice %0 {offsets = [4, 0], sizes = [1, 32], strides = [1, 1]} : vector<8x128xf32> to vector<1x32xf32>
    %6 = vector.extract_strided_slice %0 {offsets = [5, 0], sizes = [1, 32], strides = [1, 1]} : vector<8x128xf32> to vector<1x32xf32>
    %c0_1 = arith.constant 0 : index
    %c0_2 = arith.constant 0 : index
    %7 = vector.load %arg1[%c0_1, %c0_2] : memref<16x32xf32, #tpu.memory_space<vmem>>, vector<16x32xf32>
    %c0_3 = arith.constant 0 : index
    %c0_4 = arith.constant 0 : index
    %8 = vector.load %arg3[%c0_3, %c0_4] : memref<32x128xf32, #tpu.memory_space<vmem>>, vector<32x128xf32>
    %cst = arith.constant dense<0.000000e+00> : vector<16x128xf32>
    %9 = tpu.matmul %7, %8, %cst {dimension_numbers = #tpu.dot_dimension_numbers<[1], [0], [0], [1], [0, 0, 1, 1], [], []>} : vector<16x32xf32>, vector<32x128xf32>, vector<16x128xf32> -> vector<16x128xf32>
    %10 = vector.broadcast %1 : vector<1x128xf32> to vector<16x128xf32>
    %11 = arith.addf %9, %10 : vector<16x128xf32>
    %c0_5 = arith.constant 0 : index
    %c0_6 = arith.constant 0 : index
    %12 = vector.load %arg2[%c0_5, %c0_6] : memref<48x32xf32, #tpu.memory_space<vmem>>, vector<48x32xf32>
    %c0_7 = arith.constant 0 : index
    %c0_8 = arith.constant 0 : index
    %13 = vector.load %arg4[%c0_7, %c0_8] : memref<32x32xf32, #tpu.memory_space<vmem>>, vector<32x32xf32>
    %cst_9 = arith.constant dense<0.000000e+00> : vector<48x32xf32>
    %14 = tpu.matmul %12, %13, %cst_9 {dimension_numbers = #tpu.dot_dimension_numbers<[1], [0], [0], [1], [0, 0, 1, 1], [], []>} : vector<48x32xf32>, vector<32x32xf32>, vector<48x32xf32> -> vector<48x32xf32>
    %15 = vector.broadcast %2 : vector<1x32xf32> to vector<48x32xf32>
    %16 = arith.addf %14, %15 : vector<48x32xf32>
    %17 = tpu.iota {dimensions = array<i32: 1>} : vector<96x16xi32>
    %c0_10 = arith.constant 0 : index
    %c0_11 = arith.constant 0 : index
    %18 = vector.load %arg6[%c0_10, %c0_11] : memref<96x1xi32, #tpu.memory_space<vmem>>, vector<96x1xi32>
    %19 = vector.broadcast %18 : vector<96x1xi32> to vector<96x16xi32>
    %20 = arith.cmpi eq, %19, %17 : vector<96x16xi32>
    %21 = arith.extui %20 : vector<96x16xi1> to vector<96x16xi32>
    %22 = arith.sitofp %21 : vector<96x16xi32> to vector<96x16xf32>
    %cst_12 = arith.constant dense<0.000000e+00> : vector<96x128xf32>
    %23 = tpu.matmul %22, %11, %cst_12 {dimension_numbers = #tpu.dot_dimension_numbers<[1], [0], [0], [1], [0, 0, 1, 1], [], []>} : vector<96x16xf32>, vector<16x128xf32>, vector<96x128xf32> -> vector<96x128xf32>
    %24 = vector.extract_strided_slice %23 {offsets = [0, 0], sizes = [48, 128], strides = [1, 1]} : vector<96x128xf32> to vector<48x128xf32>
    %25 = vector.extract_strided_slice %23 {offsets = [48, 0], sizes = [48, 128], strides = [1, 1]} : vector<96x128xf32> to vector<48x128xf32>
    %26 = vector.extract_strided_slice %24 {offsets = [0, 0], sizes = [48, 32], strides = [1, 1]} : vector<48x128xf32> to vector<48x32xf32>
    %27 = vector.extract_strided_slice %25 {offsets = [0, 32], sizes = [48, 32], strides = [1, 1]} : vector<48x128xf32> to vector<48x32xf32>
    %28 = vector.extract_strided_slice %25 {offsets = [0, 96], sizes = [48, 32], strides = [1, 1]} : vector<48x128xf32> to vector<48x32xf32>
    %29 = arith.addf %26, %27 : vector<48x32xf32>
    %30 = arith.addf %29, %16 : vector<48x32xf32>
    %cst_13 = arith.constant 0.000000e+00 : f32
    %31 = vector.broadcast %cst_13 : f32 to vector<48x32xf32>
    %32 = arith.subf %31, %30 : vector<48x32xf32>
    %33 = math.exp %32 : vector<48x32xf32>
    %cst_14 = arith.constant 1.000000e+00 : f32
    %34 = vector.broadcast %cst_14 : f32 to vector<48x32xf32>
    %35 = arith.addf %34, %33 : vector<48x32xf32>
    %36 = tpu.reciprocal %35 {approx = true} : vector<48x32xf32> -> vector<48x32xf32>
    %37 = arith.mulf %28, %36 : vector<48x32xf32>
    %c0_15 = arith.constant 0 : index
    %c0_16 = arith.constant 0 : index
    %38 = vector.load %arg10[%c0_15, %c0_16] : memref<48x64xf32, #tpu.memory_space<vmem>>, vector<48x32xf32>
    tpu.vector_store %arg10[%c0_15, %c0_16], %37 {strides = array<i32>} : memref<48x64xf32, #tpu.memory_space<vmem>>, vector<48x32xf32>,
    %c0_17 = arith.constant 0 : index
    %c32 = arith.constant 32 : index
    %39 = vector.load %arg10[%c0_17, %c32] : memref<48x64xf32, #tpu.memory_space<vmem>>, vector<48x32xf32>
    tpu.vector_store %arg10[%c0_17, %c32], %36 {strides = array<i32>} : memref<48x64xf32, #tpu.memory_space<vmem>>, vector<48x32xf32>,
    %40 = tpu.iota {dimensions = array<i32: 0>} : vector<16x48xi32>
    %c0_18 = arith.constant 0 : index
    %c0_19 = arith.constant 0 : index
    %41 = vector.load %arg7[%c0_18, %c0_19] : memref<1x48xi32, #tpu.memory_space<vmem>>, vector<1x48xi32>
    %42 = vector.broadcast %41 : vector<1x48xi32> to vector<16x48xi32>
    %43 = arith.cmpi eq, %40, %42 : vector<16x48xi32>
    %44 = arith.extui %43 : vector<16x48xi1> to vector<16x48xi32>
    %45 = arith.sitofp %44 : vector<16x48xi32> to vector<16x48xf32>
    %c0_20 = arith.constant 0 : index
    %c0_21 = arith.constant 0 : index
    %46 = vector.load %arg10[%c0_20, %c0_21] : memref<48x64xf32, #tpu.memory_space<vmem>>, vector<48x64xf32>
    %cst_22 = arith.constant dense<0.000000e+00> : vector<16x64xf32>
    %47 = tpu.matmul %45, %46, %cst_22 {dimension_numbers = #tpu.dot_dimension_numbers<[1], [0], [0], [1], [0, 0, 1, 1], [], []>} : vector<16x48xf32>, vector<48x64xf32>, vector<16x64xf32> -> vector<16x64xf32>
    %48 = vector.extract_strided_slice %47 {offsets = [0, 0], sizes = [16, 32], strides = [1, 1]} : vector<16x64xf32> to vector<16x32xf32>
    %49 = vector.extract_strided_slice %47 {offsets = [0, 32], sizes = [16, 32], strides = [1, 1]} : vector<16x64xf32> to vector<16x32xf32>
    %cst_23 = arith.constant 9.99999997E-7 : f32
    %50 = vector.broadcast %cst_23 : f32 to vector<16x32xf32>
    %51 = arith.addf %49, %50 : vector<16x32xf32>
    %52 = arith.divf %48, %51 : vector<16x32xf32>
    %53 = vector.extract_strided_slice %11 {offsets = [0, 64], sizes = [16, 32], strides = [1, 1]} : vector<16x128xf32> to vector<16x32xf32>
    %54 = arith.addf %53, %52 : vector<16x32xf32>
    %c0_24 = arith.constant 0 : index
    %c0_25 = arith.constant 0 : index
    %55 = vector.load %arg1[%c0_24, %c0_25] : memref<16x32xf32, #tpu.memory_space<vmem>>, vector<16x32xf32>
    %cst_26 = arith.constant dense<0.000000e+00> : vector<32xf32>
    %56 = vector.multi_reduction <add>, %54, %cst_26 [0] : vector<16x32xf32> to vector<32xf32>
    %57 = vector.shape_cast %56 : vector<32xf32> to vector<1x32xf32>
    %cst_27 = arith.constant 1.600000e+01 : f32
    %58 = vector.broadcast %cst_27 : f32 to vector<1x32xf32>
    %59 = arith.divf %57, %58 : vector<1x32xf32>
    %60 = vector.broadcast %59 : vector<1x32xf32> to vector<16x32xf32>
    %61 = arith.subf %54, %60 : vector<16x32xf32>
    %62 = arith.mulf %61, %61 : vector<16x32xf32>
    %cst_28 = arith.constant dense<0.000000e+00> : vector<32xf32>
    %63 = vector.multi_reduction <add>, %62, %cst_28 [0] : vector<16x32xf32> to vector<32xf32>
    %64 = vector.shape_cast %63 : vector<32xf32> to vector<1x32xf32>
    %cst_29 = arith.constant 1.600000e+01 : f32
    %65 = vector.broadcast %cst_29 : f32 to vector<1x32xf32>
    %66 = arith.divf %64, %65 : vector<1x32xf32>
    %67 = vector.broadcast %59 : vector<1x32xf32> to vector<16x32xf32>
    %68 = arith.subf %54, %67 : vector<16x32xf32>
    %cst_30 = arith.constant 9.99999974E-6 : f32
    %69 = vector.broadcast %cst_30 : f32 to vector<1x32xf32>
    %70 = arith.addf %66, %69 : vector<1x32xf32>
    %71 = math.rsqrt %70 : vector<1x32xf32>
    %72 = vector.broadcast %71 : vector<1x32xf32> to vector<16x32xf32>
    %73 = arith.mulf %68, %72 : vector<16x32xf32>
    %74 = vector.broadcast %3 : vector<1x32xf32> to vector<16x32xf32>
    %75 = arith.mulf %73, %74 : vector<16x32xf32>
    %76 = vector.broadcast %4 : vector<1x32xf32> to vector<16x32xf32>
    %77 = arith.addf %75, %76 : vector<16x32xf32>
    %cst_31 = arith.constant 0.000000e+00 : f32
    %78 = vector.broadcast %cst_31 : f32 to vector<16x32xf32>
    %79 = arith.subf %78, %77 : vector<16x32xf32>
    %80 = math.exp %79 : vector<16x32xf32>
    %cst_32 = arith.constant 1.000000e+00 : f32
    %81 = vector.broadcast %cst_32 : f32 to vector<16x32xf32>
    %82 = arith.addf %81, %80 : vector<16x32xf32>
    %83 = tpu.reciprocal %82 {approx = true} : vector<16x32xf32> -> vector<16x32xf32>
    %84 = arith.mulf %77, %83 : vector<16x32xf32>
    %85 = arith.addf %55, %84 : vector<16x32xf32>
    %c0_33 = arith.constant 0 : index
    %c0_34 = arith.constant 0 : index
    %86 = vector.load %arg8[%c0_33, %c0_34] : memref<16x32xf32, #tpu.memory_space<vmem>>, vector<16x32xf32>
    tpu.vector_store %arg8[%c0_33, %c0_34], %85 {strides = array<i32>} : memref<16x32xf32, #tpu.memory_space<vmem>>, vector<16x32xf32>,
    %c0_35 = arith.constant 0 : index
    %c0_36 = arith.constant 0 : index
    %87 = vector.load %arg2[%c0_35, %c0_36] : memref<48x32xf32, #tpu.memory_space<vmem>>, vector<48x32xf32>
    %cst_37 = arith.constant dense<0.000000e+00> : vector<32xf32>
    %88 = vector.multi_reduction <add>, %30, %cst_37 [0] : vector<48x32xf32> to vector<32xf32>
    %89 = vector.shape_cast %88 : vector<32xf32> to vector<1x32xf32>
    %cst_38 = arith.constant 4.800000e+01 : f32
    %90 = vector.broadcast %cst_38 : f32 to vector<1x32xf32>
    %91 = arith.divf %89, %90 : vector<1x32xf32>
    %92 = vector.broadcast %91 : vector<1x32xf32> to vector<48x32xf32>
    %93 = arith.subf %30, %92 : vector<48x32xf32>
    %94 = arith.mulf %93, %93 : vector<48x32xf32>
    %cst_39 = arith.constant dense<0.000000e+00> : vector<32xf32>
    %95 = vector.multi_reduction <add>, %94, %cst_39 [0] : vector<48x32xf32> to vector<32xf32>
    %96 = vector.shape_cast %95 : vector<32xf32> to vector<1x32xf32>
    %cst_40 = arith.constant 4.800000e+01 : f32
    %97 = vector.broadcast %cst_40 : f32 to vector<1x32xf32>
    %98 = arith.divf %96, %97 : vector<1x32xf32>
    %99 = vector.broadcast %91 : vector<1x32xf32> to vector<48x32xf32>
    %100 = arith.subf %30, %99 : vector<48x32xf32>
    %cst_41 = arith.constant 9.99999974E-6 : f32
    %101 = vector.broadcast %cst_41 : f32 to vector<1x32xf32>
    %102 = arith.addf %98, %101 : vector<1x32xf32>
    %103 = math.rsqrt %102 : vector<1x32xf32>
    %104 = vector.broadcast %103 : vector<1x32xf32> to vector<48x32xf32>
    %105 = arith.mulf %100, %104 : vector<48x32xf32>
    %106 = vector.broadcast %5 : vector<1x32xf32> to vector<48x32xf32>
    %107 = arith.mulf %105, %106 : vector<48x32xf32>
    %108 = vector.broadcast %6 : vector<1x32xf32> to vector<48x32xf32>
    %109 = arith.addf %107, %108 : vector<48x32xf32>
    %cst_42 = arith.constant 0.000000e+00 : f32
    %110 = vector.broadcast %cst_42 : f32 to vector<48x32xf32>
    %111 = arith.subf %110, %109 : vector<48x32xf32>
    %112 = math.exp %111 : vector<48x32xf32>
    %cst_43 = arith.constant 1.000000e+00 : f32
    %113 = vector.broadcast %cst_43 : f32 to vector<48x32xf32>
    %114 = arith.addf %113, %112 : vector<48x32xf32>
    %115 = tpu.reciprocal %114 {approx = true} : vector<48x32xf32> -> vector<48x32xf32>
    %116 = arith.mulf %109, %115 : vector<48x32xf32>
    %117 = arith.addf %87, %116 : vector<48x32xf32>
    %c0_44 = arith.constant 0 : index
    %c0_45 = arith.constant 0 : index
    %118 = vector.load %arg9[%c0_44, %c0_45] : memref<48x32xf32, #tpu.memory_space<vmem>>, vector<48x32xf32>
    tpu.vector_store %arg9[%c0_44, %c0_45], %117 {strides = array<i32>} : memref<48x32xf32, #tpu.memory_space<vmem>>, vector<48x32xf32>,
    return
  }
  func.func @transform_0(%arg0: i32) -> (i32, i32) {
    %c0_i32 = arith.constant 0 : i32
    %c0_i32_0 = arith.constant 0 : i32
    %c0_i32_1 = arith.constant 0 : i32
    return %c0_i32, %c0_i32_0 : i32, i32
  }
  func.func @transform_1(%arg0: i32) -> (i32, i32) {
    %c0_i32 = arith.constant 0 : i32
    %c0_i32_0 = arith.constant 0 : i32
    %c0_i32_1 = arith.constant 0 : i32
    return %c0_i32, %c0_i32_0 : i32, i32
  }
  func.func @transform_2(%arg0: i32) -> (i32, i32) {
    %c0_i32 = arith.constant 0 : i32
    %c0_i32_0 = arith.constant 0 : i32
    %c0_i32_1 = arith.constant 0 : i32
    return %c0_i32, %c0_i32_0 : i32, i32
  }
  func.func @transform_3(%arg0: i32) -> (i32, i32) {
    %c0_i32 = arith.constant 0 : i32
    %c0_i32_0 = arith.constant 0 : i32
    %c0_i32_1 = arith.constant 0 : i32
    return %c0_i32, %c0_i32_0 : i32, i32
  }
  func.func @transform_4(%arg0: i32) -> (i32, i32) {
    %c0_i32 = arith.constant 0 : i32
    %c0_i32_0 = arith.constant 0 : i32
    %c0_i32_1 = arith.constant 0 : i32
    return %c0_i32, %c0_i32_0 : i32, i32
  }
  func.func @transform_5(%arg0: i32) -> (i32, i32) {
    %c0_i32 = arith.constant 0 : i32
    %c0_i32_0 = arith.constant 0 : i32
    %c0_i32_1 = arith.constant 0 : i32
    return %c0_i32, %c0_i32_0 : i32, i32
  }
  func.func @transform_6(%arg0: i32) -> (i32, i32) {
    %c0_i32 = arith.constant 0 : i32
    %c0_i32_0 = arith.constant 0 : i32
    %c0_i32_1 = arith.constant 0 : i32
    return %c0_i32, %c0_i32_0 : i32, i32
  }
  func.func @transform_7(%arg0: i32) -> (i32, i32) {
    %c0_i32 = arith.constant 0 : i32
    %c0_i32_0 = arith.constant 0 : i32
    %c0_i32_1 = arith.constant 0 : i32
    return %c0_i32, %c0_i32_0 : i32, i32
  }
  func.func @transform_8(%arg0: i32) -> (i32, i32) {
    %c0_i32 = arith.constant 0 : i32
    %c0_i32_0 = arith.constant 0 : i32
    %c0_i32_1 = arith.constant 0 : i32
    return %c0_i32, %c0_i32_0 : i32, i32
  }
}

</mosaic_0001>

<bundles_post_ra>
// kernel: tpu_custom_call.1
= control target key start
LH: loop header
LB: loop body
LE: loop exit
PB: predicated region body
PF: predicated region fallthrough
CT: control target
= control target key end

     0   :  { %vm39_vm0 = vcmask 261120   ;;  %v1250_v3 = vmov 0   ;;  %v35_v33 = vlaneseq  ;;  %vm334_vm1 = vcmask 130048   ;;  %s1253_s14 = smov 32   ;;  %s1617_s2 = inlined_call_operand.vmem [shape: f32[32,128], index: 2, kind: input, shape index: {}]   ;;  %s1618_s0 = inlined_call_operand.vmem [shape: f32[16,32], index: 0, kind: input, shape index: {}, may-alias: {0,7}]   ;;  %s1619_s5 = inlined_call_operand.vmem [shape: s32[96,1], index: 5, kind: input, shape index: {}]   ;;  %s1620_s3 = inlined_call_operand.vmem [shape: f32[32,32], index: 3, kind: input, shape index: {}]   ;;  %s1621_s1 = inlined_call_operand.vmem [shape: f32[48,32], index: 1, kind: input, shape index: {}, may-alias: {1,8}]   ;;  %s1622_s4 = inlined_call_operand.vmem [shape: f32[8,128], index: 4, kind: input, shape index: {}]   ;;  %s1623_s8 = inlined_call_operand.vmem [shape: f32[48,32], index: 8, kind: output, shape index: {1}, may-alias: {1,8}]   ;;  %s1624_s6 = inlined_call_operand.vmem [shape: s32[1,48], index: 6, kind: input, shape index: {}]   ;;  %s1625_s7 = inlined_call_operand.vmem [shape: f32[16,32], index: 7, kind: output, shape index: {0}, may-alias: {0,7}]  }
   0x1   :  { %v31_v0 = vld [vmem:[%s1617_s2] sm:$0xff]  ;;  %v32_v1 = vld [vmem:[%s1617_s2 + $0x8] sm:$0xff]  ;;  %v33_v2 = vld [vmem:[%s1617_s2 + $0x10] sm:$0xff]  ;;  %1183 = vset.pattern.permute.xlu0 %v1250_v3  ;;  %1184 = vset.pattern.permute.xlu1 %v1250_v3  ;;  %v1251_v36 = vmov 0.0   ;;  %vm667_vm14 = vcmask 392192  }
   0x2   :  { %v1128_v4 = vpack.c.bf16 %v32_v1, %v31_v0  ;;  %v34_v5 = vld [vmem:[%s1617_s2 + $0x18] sm:$0xff]  ;;  %v29_v6 = vld [vmem:[%s1618_s0] sm:$0xff]  ;;  %v252_v9 = vld [vmem:[%s1619_s5 + $0x10] sm:$0xff]  ;;  %v249_v34 = vand.u32 127, %v35_v33  ;;  %v1415_v38 = vshrl.u32 %v35_v33, 7 }
   0x3   :  { %v1132_v7 = vpack.c.bf16 %v34_v5, %v33_v2  ;;  %1071 = vmatprep.mubr.msk.f32.mxu0 %vm39_vm0, %v29_v6  ;;  %v250_v8 = vld [vmem:[%s1619_s5] sm:$0xff]  ;;  %269 = vperm.xlu1 %1184, %v252_v9   ;;  %v251_v10 = vld [vmem:[%s1619_s5 + $0x8] sm:$0xff]  ;;  %v253_v11 = vld [vmem:[%s1619_s5 + $0x18] sm:$0xff] }
   0x4   :  { %1129 = vmatprep.subr.bf16.mxu0 %v1128_v4  ;;  %263 = vperm.xlu0 %1183, %v250_v8   ;;  %v1331_v12 = vld [vmem:[%s1618_s0 + $0x8] sm:$0xff]  ;;  %v254_v13 = vld [vmem:[%s1619_s5 + $0x20] sm:$0xff]  ;;  %v256_v15 = vld [vmem:[%s1619_s5 + $0x30] sm:$0xff]  ;;  %v37_v40 = vsub.s32 0, %v1415_v38 }
   0x5   :  { %1131 = vmatpush3.bf16.msra.mxu0 %v1128_v4  ;;  %v255_v14 = vld [vmem:[%s1619_s5 + $0x28] sm:$0xff]  ;;  %v257_v16 = vld [vmem:[%s1619_s5 + $0x38] sm:$0xff]  ;;  %v258_v17 = vld [vmem:[%s1619_s5 + $0x40] sm:$0xff] }
   0x6   :  { %1133 = vmatprep.subr.bf16.mxu0 %v1132_v7  ;;  %v259_v18 = vld [vmem:[%s1619_s5 + $0x48] sm:$0xff]  ;;  %v260_v19 = vld [vmem:[%s1619_s5 + $0x50] sm:$0xff]  ;;  %v261_v20 = vld [vmem:[%s1619_s5 + $0x58] sm:$0xff] }
   0x7   :  { %272 = vperm.xlu1 %1184, %v253_v11   ;;  %v127_v21 = vld [vmem:[%s1620_s3] sm:$0xff]  ;;  %v128_v22 = vld [vmem:[%s1620_s3 + $0x8] sm:$0xff]  ;;  %v129_v24 = vld [vmem:[%s1620_s3 + $0x10] sm:$0xff]  ;;  %v133_v11 = vsub.s32 1, %v1415_v38 }
   0x8   :  { %266 = vperm.xlu0 %1183, %v251_v10   ;;  %v1136_v23 = vpack.c.bf16 %v128_v22, %v127_v21  ;;  %v130_v25 = vld [vmem:[%s1620_s3 + $0x18] sm:$0xff]  ;;  %v1374_v27 = vld [vmem:[%s1621_s1] sm:$0xff]  ;;  %v1381_v28 = vld [vmem:[%s1621_s1 + $0x8] sm:$0xff] }
   0x9   :  { %1135 = vmatpush3.bf16.msra.mxu0 %v1132_v7  ;;  %v1140_v26 = vpack.c.bf16 %v130_v25, %v129_v24  ;;  %v1388_v29 = vld [vmem:[%s1621_s1 + $0x10] sm:$0xff]  ;;  %v1395_v30 = vld [vmem:[%s1621_s1 + $0x18] sm:$0xff]  ;;  %v1402_v31 = vld [vmem:[%s1621_s1 + $0x20] sm:$0xff] }
   0xa   :  { %1137 = vmatprep.subr.bf16.mxu0 %v1136_v23  ;;  %v1409_v32 = vld [vmem:[%s1621_s1 + $0x28] sm:$0xff]  ;;  %v1421_v41 = vld [vmem:[%s1622_s4] sm:$0xff]  ;;  %s1252_s4 = smov 96  }
   0xb   :  { %278 = vperm.xlu1 %1184, %v255_v14   ;;  %v38_v43 = vrot.slane %v1421_v41, %v37_v40 }
   0xc   :  { %1072 = vmatmul.mubr.msk.f32.vlgmr.msra.gmra.mrb[0].mxu0 %vm39_vm0, %v1331_v12  ;;  %275 = vperm.xlu0 %1183, %v254_v13   ;;  %v134_v13 = vrot.slane %v1421_v41, %v133_v11 }
   0xd   :  { %1139 = vmatpush3.bf16.msra.mxu0 %v1136_v23  ;;  %1082 = vmatprep.mubr.msk.f32.mxu0 %vm39_vm0, %v1374_v27 }
   0xe   :  { %1141 = vmatprep.subr.bf16.mxu0 %v1140_v26 }
   0xf   :  { %284 = vperm.xlu1 %1184, %v257_v16  }
  0x10   :  { %281 = vperm.xlu0 %1183, %v256_v15  }
  0x11   :  { %1143 = vmatpush3.bf16.msra.mxu0 %v1140_v26 }
  0x13   :  { %290 = vperm.xlu1 %1184, %v259_v18  }
  0x14   :  { %287 = vperm.xlu0 %1183, %v258_v17   ;;  %1083 = vmatmul.mubr.msk.f32.vlgmr.msra.gmra.mrb[2].mxu0 %vm39_vm0, %v1381_v28 }
  0x15   :  { %1085 = vmatprep.mubr.msk.f32.mxu0 %vm39_vm0, %v1388_v29 }
  0x17   :  { %296 = vperm.xlu1 %1184, %v261_v20  }
  0x18   :  { %293 = vperm.xlu0 %1183, %v260_v19   ;;  %1086 = vmatmul.mubr.msk.f32.gmra.mrb[4].mxu0 %vm39_vm0, %v1395_v30 }
  0x19   :  { %1088 = vmatprep.mubr.msk.f32.mxu0 %vm39_vm0, %v1402_v31 }
  0x1c   :  { %1089 = vmatmul.mubr.msk.f32.gmra.mrb[6].mxu0 %vm39_vm0, %v1409_v32 }
  0x82   :  { %v270_v39 = vpop.permute.xlu1 %269 }
  0x83   :  { %v264_v35 = vpop.permute.xlu0 %263  ;;  %vm300_vm3 = vcmp.eq.s32.totalorder %v270_v39, %v249_v34 }
  0x84   :  { %vm298_vm2 = vcmp.eq.s32.totalorder %v264_v35, %v249_v34  ;;  %v998_v52 = vsel %vm300_vm3, 1.0, %v1251_v36  ;;  %vm775_vm3 = vcmask 785920  }
  0x85   :  { %v996_v37 = vsel %vm298_vm2, 1.0, %v1251_v36 }
  0x86   :  { %1095 = vmatprep.mubr.msk.f32.mxu1 %vm334_vm1, %v996_v37  ;;  %v273_v44 = vpop.permute.xlu1 %272 }
  0x87   :  { %v267_v42 = vpop.permute.xlu0 %266  ;;  %vm301_vm5 = vcmp.eq.s32.totalorder %v273_v44, %v249_v34 }
  0x88   :  { %vm299_vm4 = vcmp.eq.s32.totalorder %v267_v42, %v249_v34  ;;  %v999_v56 = vsel %vm301_vm5, 1.0, %v1251_v36 }
  0x89   :  { %v997_v54 = vsel %vm299_vm4, 1.0, %v1251_v36 }
  0x8a   :  { %v279_v51 = vpop.permute.xlu1 %278 }
  0x8b   :  { %v276_v48 = vpop.permute.xlu0 %275  ;;  %vm303_vm7 = vcmp.eq.s32.totalorder %v279_v51, %v249_v34 }
  0x8c   :  { %vm302_vm6 = vcmp.eq.s32.totalorder %v276_v48, %v249_v34  ;;  %v1001_v59 = vsel %vm303_vm7, 1.0, %v1251_v36 }
  0x8d   :  { %v1000_v57 = vsel %vm302_vm6, 1.0, %v1251_v36 }
  0x8e   :  { %v285_v55 = vpop.permute.xlu1 %284 }
  0x8f   :  { %v282_v53 = vpop.permute.xlu0 %281  ;;  %vm305_vm9 = vcmp.eq.s32.totalorder %v285_v55, %v249_v34 }
  0x90   :  { %vm304_vm8 = vcmp.eq.s32.totalorder %v282_v53, %v249_v34  ;;  %v1003_v63 = vsel %vm305_vm9, 1.0, %v1251_v36 }
  0x91   :  { %v1002_v61 = vsel %vm304_vm8, 1.0, %v1251_v36 }
  0x92   :  { %v291_v60 = vpop.permute.xlu1 %290 }
  0x93   :  { %v288_v58 = vpop.permute.xlu0 %287  ;;  %vm307_vm11 = vcmp.eq.s32.totalorder %v291_v60, %v249_v34 }
  0x94   :  { %vm306_vm10 = vcmp.eq.s32.totalorder %v288_v58, %v249_v34  ;;  %v1005_v2 = vsel %vm307_vm11, 1.0, %v1251_v36 }
  0x95   :  { %v1004_v0 = vsel %vm306_vm10, 1.0, %v1251_v36 }
  0x96   :  { %v297_v1 = vpop.permute.xlu1 %296 }
  0x97   :  { %v294_v62 = vpop.permute.xlu0 %293  ;;  %vm309_vm13 = vcmp.eq.s32.totalorder %v297_v1, %v249_v34 }
  0x98   :  { %vm308_vm12 = vcmp.eq.s32.totalorder %v294_v62, %v249_v34  ;;  %v1007_v4 = vsel %vm309_vm13, 1.0, %v1251_v36 }
  0x99   :  { %v1006_v3 = vsel %vm308_vm12, 1.0, %v1251_v36 }
  0xdf   :  { %v1073_v45 = vpop.f32.mrb[0].mxu0 }
  0xe0   :  { %v1424_v46 = vadd.f32 %v1073_v45, %v38_v43  ;;  %v112_v47 = vpop.f32.mrb[1].mxu0 }
  0xe1   :  { %v1426_v49 = vadd.f32 %v112_v47, %v38_v43 }
  0xe3   :  { %v1144_v50 = vpack.c.bf16 %v1424_v46, %v1426_v49 }
  0xe5   :  { %1145 = vmatprep.subr.bf16.mxu1 %v1144_v50 }
  0xe6   :  { %1147 = vmatpush3.bf16.msra.mxu1 %v1144_v50 }
  0xe7   :  { %v1084_v5 = vpop.f32.mrb[2].mxu0 }
  0xe8   :  { %v219_v6 = vpop.f32.mrb[3].mxu0  ;;  %v225_v14 = vadd.f32 %v1084_v5, %v134_v13 }
  0xe9   :  { %1096 = vmatmul.mubr.msk.f32.vlgmr.msra.gmra.mrb[0].mxu1 %vm334_vm1, %v997_v54  ;;  %v220_v15 = vadd.f32 %v219_v6, %v134_v13 }
  0xea   :  { %1098 = vmatprep.mubr.msk.f32.mxu1 %vm334_vm1, %v998_v52 }
  0xeb   :  { %v1087_v7 = vpop.f32.mrb[4].mxu0 }
  0xec   :  { %v229_v8 = vpop.f32.mrb[5].mxu0  ;;  %v235_v19 = vadd.f32 %v1087_v7, %v134_v13 }
  0xed   :  { %1099 = vmatmul.mubr.msk.f32.gmra.mrb[2].mxu1 %vm334_vm1, %v999_v56  ;;  %v230_v21 = vadd.f32 %v229_v8, %v134_v13 }
  0xee   :  { %1101 = vmatprep.mubr.msk.f32.mxu1 %vm334_vm1, %v1000_v57 }
  0xef   :  { %v1090_v9 = vpop.f32.mrb[6].mxu0 }
  0xf0   :  { %v239_v10 = vpop.f32.mrb[7].mxu0  ;;  %v245_v25 = vadd.f32 %v1090_v9, %v134_v13 }
  0xf1   :  { %1102 = vmatmul.mubr.msk.f32.gmra.mrb[4].mxu1 %vm334_vm1, %v1001_v59  ;;  %v240_v33 = vadd.f32 %v239_v10, %v134_v13 }
  0xf2   :  { %1104 = vmatprep.mubr.msk.f32.mxu1 %vm334_vm1, %v1002_v61 }
  0xf5   :  { %1105 = vmatmul.mubr.msk.f32.gmra.mrb[6].mxu1 %vm334_vm1, %v1003_v63 }
  0xf6   :  { %1107 = vmatprep.mubr.msk.f32.mxu1 %vm334_vm1, %v1004_v0 }
  0xf9   :  { %1108 = vmatmul.mubr.msk.f32.gmra.mrb[8].mxu1 %vm334_vm1, %v1005_v2 }
  0xfa   :  { %1110 = vmatprep.mubr.msk.f32.mxu1 %vm334_vm1, %v1006_v3 }
  0xfd   :  { %1111 = vmatmul.mubr.msk.f32.gmra.mrb[10].mxu1 %vm334_vm1, %v1007_v4  ;;  %vm640_vm1 = vcmask 523520  }
 0x1bc   :  { %v1097_v16 = vpop.f32.mrb[0].mxu1 }
 0x1bd   :  { %v1161_v17 = vadd.f32 %v1097_v16, %v225_v14  ;;  %v437_v18 = vpop.f32.mrb[1].mxu1 }
 0x1be   :  { %v1164_v20 = vadd.f32 %v437_v18, %v220_v15 }
 0x1c0   :  { %v1100_v22 = vpop.f32.mrb[2].mxu1 }
 0x1c1   :  { %v1167_v23 = vadd.f32 %v1100_v22, %v235_v19  ;;  %v447_v24 = vpop.f32.mrb[3].mxu1 }
 0x1c2   :  { %v1170_v26 = vadd.f32 %v447_v24, %v230_v21 }
 0x1c4   :  { %v1103_v34 = vpop.f32.mrb[4].mxu1 }
 0x1c5   :  { %v1173_v35 = vadd.f32 %v1103_v34, %v245_v25  ;;  %v457_v37 = vpop.f32.mrb[5].mxu1 }
 0x1c6   :  { %v1176_v39 = vadd.f32 %v457_v37, %v240_v33 }
 0x1c8   :  { %v1454_v40 = vpop.f32.mrb[6].mxu1 }
 0x1c9   :  { %504 = vrot.lane.b32.xlu1 %v1454_v40, %s1252_s4  ;;  %v1458_v42 = vpop.f32.mrb[7].mxu1 }
 0x1ca   :  { %502 = vrot.lane.b32.xlu0 %v1458_v42, %s1252_s4 }
 0x1cc   :  { %v1462_v43 = vpop.f32.mrb[8].mxu1 }
 0x1cd   :  { %508 = vrot.lane.b32.xlu1 %v1462_v43, %s1252_s4  ;;  %v1466_v44 = vpop.f32.mrb[9].mxu1 }
 0x1ce   :  { %506 = vrot.lane.b32.xlu0 %v1466_v44, %s1252_s4 }
 0x1d0   :  { %v1470_v45 = vpop.f32.mrb[10].mxu1 }
 0x1d1   :  { %512 = vrot.lane.b32.xlu1 %v1470_v45, %s1252_s4  ;;  %v1474_v47 = vpop.f32.mrb[11].mxu1 }
 0x1d2   :  { %510 = vrot.lane.b32.xlu0 %v1474_v47, %s1252_s4 }
 0x23b   :  { %v505_v48 = vpop.permute.xlu1 %504 }
 0x23c   :  { %v1478_v50 = vadd.f32 %v1161_v17, %v505_v48  ;;  %v503_v51 = vpop.permute.xlu0 %502 }
 0x23d   :  { %v1480_v52 = vadd.f32 %v1164_v20, %v503_v51 }
 0x23e   :  { %v533_v53 = vsub.f32 0.0, %v1478_v50  ;;  %v856_v54 = vsel %vm39_vm0, %v1478_v50, 0.0 }
 0x23f   :  { %v532_v55 = vsub.f32 0.0, %v1480_v52  ;;  %v855_v56 = vsel %vm39_vm0, %v1480_v52, 0.0  ;;  %v509_v57 = vpop.permute.xlu1 %508 }
 0x240   :  { %v540_v58 = vmul.f32 1.442695, %v533_v53  ;;  %v857_v59 = vadd.f32 %v856_v54, %v855_v56  ;;  %v1168_v60 = vadd.f32 %v1167_v23, %v509_v57  ;;  %v507_v61 = vpop.permute.xlu0 %506 }
 0x241   :  { %v538_v62 = vmul.f32 1.442695, %v532_v55  ;;  %v1171_v63 = vadd.f32 %v1170_v26, %v507_v61 }
 0x242   :  { %1185 = vpow2.f32 %v540_v58  ;;  %v535_v0 = vsub.f32 0.0, %v1168_v60  ;;  %v860_v8 = vsel %vm39_vm0, %v1168_v60, 0.0 }
 0x243   :  { %1187 = vpow2.f32 %v538_v62  ;;  %v534_v1 = vsub.f32 0.0, %v1171_v63  ;;  %v858_v2 = vsel %vm39_vm0, %v1171_v63, 0.0  ;;  %v513_v3 = vpop.permute.xlu1 %512 }
 0x244   :  { %v544_v4 = vmul.f32 1.442695, %v535_v0  ;;  %v859_v5 = vadd.f32 %v858_v2, %v857_v59  ;;  %v1174_v6 = vadd.f32 %v1173_v35, %v513_v3  ;;  %v511_v7 = vpop.permute.xlu0 %510 }
 0x245   :  { %v542_v9 = vmul.f32 1.442695, %v534_v1  ;;  %v1177_v10 = vadd.f32 %v1176_v39, %v511_v7 }
 0x246   :  { %1189 = vpow2.f32 %v544_v4  ;;  %v537_v11 = vsub.f32 0.0, %v1174_v6  ;;  %v861_v13 = vadd.f32 %v860_v8, %v859_v5  ;;  %v864_v18 = vsel %vm39_vm0, %v1174_v6, 0.0 }
 0x247   :  { %1191 = vpow2.f32 %v542_v9  ;;  %v536_v14 = vsub.f32 0.0, %v1177_v10  ;;  %v862_v15 = vsel %vm39_vm0, %v1177_v10, 0.0 }
 0x248   :  { %v548_v16 = vmul.f32 1.442695, %v537_v11  ;;  %v863_v17 = vadd.f32 %v862_v15, %v861_v13 }
 0x249   :  { %v546_v19 = vmul.f32 1.442695, %v536_v14 }
 0x24a   :  { %1193 = vpow2.f32 %v548_v16  ;;  %v865_v20 = vadd.f32 %v864_v18, %v863_v17 }
 0x24b   :  { %1195 = vpow2.f32 %v546_v19 }
 0x24c   :  { %v1186_v21 = vpop.eup %1185  ;;  %v866_v22 = vrot.slane %v865_v20, 4 }
 0x24d   :  { %v1188_v23 = vpop.eup %1187  ;;  %v551_v24 = vadd.f32 1.0, %v1186_v21 }
 0x24e   :  { %v550_v25 = vadd.f32 1.0, %v1188_v23  ;;  %v867_v26 = vadd.f32 %v866_v22, %v865_v20 }
 0x24f   :  { %1197 = vrcp.f32 %v551_v24 }
 0x250   :  { %v1190_v33 = vpop.eup %1189  ;;  %1199 = vrcp.f32 %v550_v25  ;;  %v868_v34 = vrot.slane %v867_v26, 2 }
 0x251   :  { %v1192_v35 = vpop.eup %1191  ;;  %v553_v37 = vadd.f32 1.0, %v1190_v33 }
 0x252   :  { %v552_v39 = vadd.f32 1.0, %v1192_v35  ;;  %v869_v48 = vadd.f32 %v868_v34, %v867_v26 }
 0x253   :  { %1201 = vrcp.f32 %v553_v37 }
 0x254   :  { %v1194_v51 = vpop.eup %1193  ;;  %1203 = vrcp.f32 %v552_v39  ;;  %v870_v53 = vrot.slane %v869_v48, 1  ;;  %v914_v39 = vsub.s32 4, %v1415_v38 }
 0x255   :  { %v1196_v54 = vpop.eup %1195  ;;  %v555_v55 = vadd.f32 1.0, %v1194_v51 }
 0x256   :  { %v554_v56 = vadd.f32 1.0, %v1196_v54  ;;  %v871_v57 = vadd.f32 %v870_v53, %v869_v48  ;;  %v924_v48 = vsub.s32 5, %v1415_v38  ;;  %v915_v51 = vrot.slane %v1421_v41, %v914_v39 }
 0x257   :  { %1205 = vrcp.f32 %v555_v55 }
 0x258   :  { %1207 = vrcp.f32 %v554_v56  ;;  %v873_v58 = vmul.f32 0.020833334, %v871_v57  ;;  %v925_v54 = vrot.slane %v1421_v41, %v924_v48 }
 0x259   :  { %v1198_v59 = vpop.eup %1197 }
 0x25a   :  { %v1200_v61 = vpop.eup %1199  ;;  %v874_v62 = vsub.f32 %v1480_v52, %v873_v58  ;;  %v875_v0 = vsub.f32 %v1478_v50, %v873_v58  ;;  %v876_v1 = vsub.f32 %v1171_v63, %v873_v58  ;;  %v877_v2 = vsub.f32 %v1168_v60, %v873_v58  ;;  %570 = vrot.lane.b32.xlu1 %v1198_v59, %s1252_s4 }
 0x25b   :  { %v878_v3 = vsub.f32 %v1177_v10, %v873_v58  ;;  %v879_v4 = vsub.f32 %v1174_v6, %v873_v58  ;;  %568 = vrot.lane.b32.xlu0 %v1200_v61, %s1252_s4 }
 0x25c   :  { %v880_v5 = vmul.f32 %v874_v62, %v874_v62  ;;  %v881_v7 = vmul.f32 %v875_v0, %v875_v0  ;;  %v882_v8 = vmul.f32 %v876_v1, %v876_v1  ;;  %v883_v13 = vmul.f32 %v877_v2, %v877_v2 }
 0x25d   :  { %v1202_v9 = vpop.eup %1201  ;;  %v884_v60 = vmul.f32 %v878_v3, %v878_v3  ;;  %v885_v16 = vmul.f32 %v879_v4, %v879_v4 }
 0x25e   :  { %v1204_v11 = vpop.eup %1203  ;;  %v886_v14 = vsel %vm39_vm0, %v880_v5, 0.0  ;;  %v887_v52 = vsel %vm39_vm0, %v881_v7, 0.0  ;;  %574 = vrot.lane.b32.xlu1 %v1202_v9, %s1252_s4  ;;  %v889_v63 = vsel %vm39_vm0, %v882_v8, 0.0  ;;  %v891_v17 = vsel %vm39_vm0, %v883_v13, 0.0 }
 0x25f   :  { %v888_v50 = vadd.f32 %v887_v52, %v886_v14  ;;  %572 = vrot.lane.b32.xlu0 %v1204_v11, %s1252_s4  ;;  %v893_v19 = vsel %vm39_vm0, %v884_v60, 0.0  ;;  %v895_v21 = vsel %vm39_vm0, %v885_v16, 0.0 }
 0x261   :  { %v1501_v6 = vpop.eup %1205  ;;  %v890_v10 = vadd.f32 %v889_v63, %v888_v50 }
 0x262   :  { %v1503_v15 = vpop.eup %1207  ;;  %578 = vrot.lane.b32.xlu1 %v1501_v6, %s1252_s4 }
 0x263   :  { %v892_v18 = vadd.f32 %v891_v17, %v890_v10  ;;  %576 = vrot.lane.b32.xlu0 %v1503_v15, %s1252_s4 }
 0x265   :  { %v894_v20 = vadd.f32 %v893_v19, %v892_v18 }
 0x266   :  { %624 = vrot.lane.b32.xlu1 %v1198_v59, %s1253_s14 }
 0x267   :  { %v896_v22 = vadd.f32 %v895_v21, %v894_v20  ;;  %622 = vrot.lane.b32.xlu0 %v1200_v61, %s1253_s14 }
 0x269   :  { %v897_v23 = vrot.slane %v896_v22, 4 }
 0x26a   :  { %628 = vrot.lane.b32.xlu1 %v1202_v9, %s1253_s14 }
 0x26b   :  { %v898_v24 = vadd.f32 %v897_v23, %v896_v22  ;;  %626 = vrot.lane.b32.xlu0 %v1204_v11, %s1253_s14 }
 0x26d   :  { %v899_v25 = vrot.slane %v898_v24, 2 }
 0x26f   :  { %v900_v26 = vadd.f32 %v899_v25, %v898_v24 }
 0x271   :  { %v901_v33 = vrot.slane %v900_v26, 1 }
 0x273   :  { %v902_v34 = vadd.f32 %v901_v33, %v900_v26 }
 0x275   :  { %v903_v35 = vmul.f32 0.020833334, %v902_v34 }
 0x277   :  { %v904_v37 = vadd.f32 1e-05, %v903_v35 }
 0x279   :  { %1209 = vrsqrt.f32 %v904_v37 }
 0x283   :  { %v1210_v53 = vpop.eup %1209 }
 0x284   :  { %v906_v55 = vmul.f32 %v1210_v53, %v874_v62  ;;  %v907_v56 = vmul.f32 %v1210_v53, %v875_v0  ;;  %v908_v57 = vmul.f32 %v1210_v53, %v876_v1  ;;  %v909_v58 = vmul.f32 %v1210_v53, %v877_v2 }
 0x285   :  { %v910_v59 = vmul.f32 %v1210_v53, %v878_v3  ;;  %v911_v61 = vmul.f32 %v1210_v53, %v879_v4 }
 0x286   :  { %v916_v5 = vmul.f32 %v915_v51, %v906_v55  ;;  %v917_v7 = vmul.f32 %v915_v51, %v907_v56  ;;  %v918_v8 = vmul.f32 %v915_v51, %v908_v57  ;;  %v919_v9 = vmul.f32 %v915_v51, %v909_v58 }
 0x287   :  { %v920_v11 = vmul.f32 %v915_v51, %v910_v59  ;;  %v921_v13 = vmul.f32 %v915_v51, %v911_v61 }
 0x288   :  { %v926_v14 = vadd.f32 %v925_v54, %v916_v5  ;;  %v927_v52 = vadd.f32 %v925_v54, %v917_v7  ;;  %v928_v50 = vadd.f32 %v925_v54, %v918_v8  ;;  %v929_v60 = vadd.f32 %v925_v54, %v919_v9 }
 0x289   :  { %v930_v63 = vadd.f32 %v925_v54, %v920_v11  ;;  %v931_v10 = vadd.f32 %v925_v54, %v921_v13 }
 0x28a   :  { %v932_v16 = vsub.f32 0.0, %v926_v14  ;;  %v933_v17 = vsub.f32 0.0, %v927_v52  ;;  %v934_v62 = vsub.f32 0.0, %v928_v50  ;;  %v935_v0 = vsub.f32 0.0, %v929_v60 }
 0x28b   :  { %v936_v1 = vsub.f32 0.0, %v930_v63  ;;  %v937_v2 = vsub.f32 0.0, %v931_v10 }
 0x28c   :  { %v938_v3 = vmul.f32 1.442695, %v932_v16  ;;  %v940_v4 = vmul.f32 1.442695, %v933_v17  ;;  %v942_v18 = vmul.f32 1.442695, %v934_v62 }
 0x28d   :  { %v944_v19 = vmul.f32 1.442695, %v935_v0  ;;  %v946_v20 = vmul.f32 1.442695, %v936_v1  ;;  %v948_v21 = vmul.f32 1.442695, %v937_v2 }
 0x28e   :  { %1211 = vpow2.f32 %v938_v3 }
 0x28f   :  { %1213 = vpow2.f32 %v940_v4 }
 0x290   :  { %1215 = vpow2.f32 %v942_v18 }
 0x291   :  { %1217 = vpow2.f32 %v944_v19 }
 0x292   :  { %1219 = vpow2.f32 %v946_v20 }
 0x293   :  { %1221 = vpow2.f32 %v948_v21 }
 0x298   :  { %v1212_v22 = vpop.eup %1211 }
 0x299   :  { %v1214_v23 = vpop.eup %1213  ;;  %v950_v24 = vadd.f32 1.0, %v1212_v22 }
 0x29a   :  { %v1216_v25 = vpop.eup %1215  ;;  %v951_v26 = vadd.f32 1.0, %v1214_v23 }
 0x29b   :  { %v1218_v33 = vpop.eup %1217  ;;  %v952_v34 = vadd.f32 1.0, %v1216_v25  ;;  %1223 = vrcp.f32 %v950_v24 }
 0x29c   :  { %v1220_v35 = vpop.eup %1219  ;;  %v953_v37 = vadd.f32 1.0, %v1218_v33  ;;  %1225 = vrcp.f32 %v951_v26  ;;  %v649_v26 = vadd.s32 8, %v1415_v38 }
 0x29d   :  { %v1222_v39 = vpop.eup %1221  ;;  %v954_v48 = vadd.f32 1.0, %v1220_v35  ;;  %1227 = vrcp.f32 %v952_v34 }
 0x29e   :  { %v955_v51 = vadd.f32 1.0, %v1222_v39  ;;  %1229 = vrcp.f32 %v953_v37 }
 0x29f   :  { %1231 = vrcp.f32 %v954_v48 }
 0x2a0   :  { %1233 = vrcp.f32 %v955_v51 }
 0x2a5   :  { %v1224_v53 = vpop.eup %1223 }
 0x2a6   :  { %v1226_v54 = vpop.eup %1225  ;;  %v962_v55 = vmul.f32 %v1224_v53, %v926_v14 }
 0x2a7   :  { %v1228_v56 = vpop.eup %1227  ;;  %v963_v57 = vmul.f32 %v1226_v54, %v927_v52 }
 0x2a8   :  { %v1230_v58 = vpop.eup %1229  ;;  %v964_v59 = vmul.f32 %v1228_v56, %v928_v50  ;;  %v968_v61 = vadd.f32 %v962_v55, %v1374_v27  ;;  %v817_v56 = vsub.s32 3, %v1415_v38 }
 0x2a9   :  { %v1232_v5 = vpop.eup %1231  ;;  %v965_v7 = vmul.f32 %v1230_v58, %v929_v60  ;;  %v969_v8 = vadd.f32 %v963_v57, %v1381_v28  ;;  %v807_v58 = vsub.s32 2, %v1415_v38 }
 0x2aa   :  { %v1234_v9 = vpop.eup %1233  ;;  %v966_v11 = vmul.f32 %v1232_v5, %v930_v63  ;;  %v970_v13 = vadd.f32 %v964_v59, %v1388_v29  ;;  %974 = vst.msk [vmem:[%s1623_s8] sm:$0xff] %vm39_vm0, %v968_v61  ;;  %v818_v5 = vrot.slane %v1421_v41, %v817_v56 }
 0x2ab   :  { %v967_v14 = vmul.f32 %v1234_v9, %v931_v10  ;;  %v971_v52 = vadd.f32 %v965_v7, %v1395_v30  ;;  %975 = vst.msk [vmem:[%s1623_s8 + $0x8] sm:$0xff] %vm39_vm0, %v969_v8  ;;  %v808_v7 = vrot.slane %v1421_v41, %v807_v58 }
 0x2ac   :  { %v972_v27 = vadd.f32 %v966_v11, %v1402_v31  ;;  %976 = vst.msk [vmem:[%s1623_s8 + $0x10] sm:$0xff] %vm39_vm0, %v970_v13 }
 0x2ad   :  { %v973_v28 = vadd.f32 %v967_v14, %v1409_v32  ;;  %977 = vst.msk [vmem:[%s1623_s8 + $0x18] sm:$0xff] %vm39_vm0, %v971_v52 }
 0x2ae   :  { %978 = vst.msk [vmem:[%s1623_s8 + $0x20] sm:$0xff] %vm39_vm0, %v972_v27 }
 0x2af   :  { %979 = vst.msk [vmem:[%s1623_s8 + $0x28] sm:$0xff] %vm39_vm0, %v973_v28 }
 0x2cc   :  { %v571_v29 = vpop.permute.xlu1 %570 }
 0x2cd   :  { %v587_v30 = vmul.f32 %v1454_v40, %v571_v29  ;;  %v569_v31 = vpop.permute.xlu0 %568 }
 0x2ce   :  { %v586_v32 = vmul.f32 %v569_v31, %v1458_v42 }
 0x2cf   :  { %600 = vrot.lane.b32.xlu1 %v587_v30, %s1253_s14 }
 0x2d0   :  { %v575_v50 = vpop.permute.xlu1 %574  ;;  %598 = vrot.lane.b32.xlu0 %v586_v32, %s1253_s14 }
 0x2d1   :  { %v589_v60 = vmul.f32 %v1462_v43, %v575_v50  ;;  %v573_v63 = vpop.permute.xlu0 %572  ;;  %v1020_v43 = vld [vmem:[%s1624_s6] ss:$0 sm:$0xff]  ;;  %s1254_s6 = smov 64  }
 0x2d2   :  { %v588_v10 = vmul.f32 %v573_v63, %v1466_v44  ;;  %vm655_vm15 = vcmp.eq.s32.totalorder %v1415_v38, %v1020_v43  ;;  %vm656_vm2 = vcmp.eq.s32.totalorder %v649_v26, %v1020_v43 }
 0x2d3   :  { %604 = vrot.lane.b32.xlu1 %v589_v60, %s1253_s14  ;;  %v1021_v44 = vsel %vm655_vm15, 1.0, %v1251_v36  ;;  %v1022_v37 = vsel %vm656_vm2, 1.0, %v1251_v36 }
 0x2d4   :  { %v579_v16 = vpop.permute.xlu1 %578  ;;  %602 = vrot.lane.b32.xlu0 %v588_v10, %s1253_s14  ;;  %1125 = vmatprep.mubr.msk.f32.mxu0 %vm667_vm14, %v1021_v44 }
 0x2d5   :  { %v591_v40 = vmul.f32 %v1470_v45, %v579_v16  ;;  %v577_v17 = vpop.permute.xlu0 %576 }
 0x2d6   :  { %v590_v42 = vmul.f32 %v577_v17, %v1474_v47 }
 0x2d7   :  { %608 = vrot.lane.b32.xlu1 %v591_v40, %s1253_s14 }
 0x2d8   :  { %606 = vrot.lane.b32.xlu0 %v590_v42, %s1253_s14  ;;  %v625_v45 = vpop.permute.xlu1 %624 }
 0x2d9   :  { %v623_v47 = vpop.permute.xlu0 %622 }
 0x2db   :  { %632 = vrot.lane.b32.xlu1 %v1501_v6, %s1253_s14 }
 0x2dc   :  { %630 = vrot.lane.b32.xlu0 %v1503_v15, %s1253_s14  ;;  %v629_v62 = vpop.permute.xlu1 %628 }
 0x2dd   :  { %v627_v0 = vpop.permute.xlu0 %626 }
 0x341   :  { %v601_v6 = vpop.permute.xlu1 %600 }
 0x342   :  { %617 = vst.msk [vmem:[#allocation2 + $0x8] sm:$0xff] %vm39_vm0, %v601_v6  ;;  %v599_v1 = vpop.permute.xlu0 %598 }
 0x343   :  { %642 = vst.msk [vmem:[#allocation2 + $0x8] sm:$0xff] %vm640_vm1, %v625_v45 }
 0x344   :  { %616 = vst.msk [vmem:[#allocation2] sm:$0xff] %vm39_vm0, %v599_v1 }
 0x345   :  { %641 = vst.msk [vmem:[#allocation2] sm:$0xff] %vm640_vm1, %v623_v47  ;;  %v605_v15 = vpop.permute.xlu1 %604 }
 0x346   :  { %619 = vst.msk [vmem:[#allocation2 + $0x18] sm:$0xff] %vm39_vm0, %v605_v15  ;;  %v603_v2 = vpop.permute.xlu0 %602 }
 0x347   :  { %644 = vst.msk [vmem:[#allocation2 + $0x18] sm:$0xff] %vm640_vm1, %v629_v62 }
 0x348   :  { %618 = vst.msk [vmem:[#allocation2 + $0x10] sm:$0xff] %vm39_vm0, %v603_v2 }
 0x349   :  { %643 = vst.msk [vmem:[#allocation2 + $0x10] sm:$0xff] %vm640_vm1, %v627_v0  ;;  %v609_v3 = vpop.permute.xlu1 %608 }
 0x34a   :  { %621 = vst.msk [vmem:[#allocation2 + $0x28] sm:$0xff] %vm39_vm0, %v609_v3  ;;  %v607_v4 = vpop.permute.xlu0 %606  ;;  %v662_v18 = vld [vmem:[#allocation2 + $0x8] sm:$0xff] }
 0x34b   :  { %620 = vst.msk [vmem:[#allocation2 + $0x20] sm:$0xff] %vm39_vm0, %v607_v4 }
 0x34c   :  { %v661_v19 = vld [vmem:[#allocation2] sm:$0xff] }
 0x34d   :  { %v1148_v20 = vpack.c.bf16 %v662_v18, %v661_v19  ;;  %v633_v21 = vpop.permute.xlu1 %632 }
 0x34e   :  { %646 = vst.msk [vmem:[#allocation2 + $0x28] sm:$0xff] %vm640_vm1, %v633_v21  ;;  %v631_v22 = vpop.permute.xlu0 %630  ;;  %v664_v23 = vld [vmem:[#allocation2 + $0x18] sm:$0xff] }
 0x34f   :  { %1149 = vmatprep.subr.bf16.mxu0 %v1148_v20  ;;  %645 = vst.msk [vmem:[#allocation2 + $0x20] sm:$0xff] %vm640_vm1, %v631_v22 }
 0x350   :  { %1151 = vmatpush3.bf16.msra.mxu0 %v1148_v20  ;;  %v663_v24 = vld [vmem:[#allocation2 + $0x10] sm:$0xff] }
 0x351   :  { %v1152_v25 = vpack.c.bf16 %v664_v23, %v663_v24 }
 0x353   :  { %1153 = vmatprep.subr.bf16.mxu0 %v1152_v25 }
 0x354   :  { %1155 = vmatpush3.bf16.msra.mxu0 %v1152_v25 }
 0x355   :  { %v666_v33 = vld [vmem:[#allocation2 + $0x28] sm:$0xff] }
 0x356   :  { %v665_v34 = vld [vmem:[#allocation2 + $0x20] sm:$0xff] }
 0x357   :  { %v1156_v35 = vpack.c.bf16 %v666_v33, %v665_v34 }
 0x359   :  { %1157 = vmatprep.subr.bf16.mxu0 %v1156_v35 }
 0x35a   :  { %1159 = vmatpush3.bf16.msra.mxu0 %v1156_v35 }
 0x35d   :  { %1126 = vmatmul.mubr.msk.f32.vlgmr.msra.gmra.mrb[8].mxu0 %vm667_vm14, %v1022_v37 }
 0x430   :  { %v1127_v39 = vpop.f32.mrb[8].mxu0 }
 0x431   :  { %v750_v48 = vadd.f32 1e-06, %v1127_v39  ;;  %v740_v51 = vpop.f32.mrb[9].mxu0 }
 0x432   :  { %v749_v53 = vadd.f32 1e-06, %v740_v51 }
 0x433   :  { %755 = vrot.lane.b32.xlu1 %v750_v48, %s1252_s4 }
 0x434   :  { %753 = vrot.lane.b32.xlu0 %v749_v53, %s1252_s4  ;;  %v1249_v53 = vld [vmem:[%s1618_s0] sm:$0xff] }
 0x4a5   :  { %v756_v54 = vpop.permute.xlu1 %755 }
 0x4a6   :  { %1235 = vrcp.f32 %v756_v54  ;;  %v754_v55 = vpop.permute.xlu0 %753 }
 0x4a7   :  { %1237 = vrcp.f32 %v754_v55 }
 0x4b0   :  { %v1236_v57 = vpop.eup %1235 }
 0x4b1   :  { %v1238_v36 = vpop.eup %1237  ;;  %v762_v59 = vmul.f32 %v1236_v57, %v1127_v39 }
 0x4b2   :  { %v760_v61 = vmul.f32 %v1238_v36, %v740_v51 }
 0x4b3   :  { %767 = vrot.lane.b32.xlu1 %v762_v59, %s1254_s6 }
 0x4b4   :  { %765 = vrot.lane.b32.xlu0 %v760_v61, %s1254_s6 }
 0x4b7   :  { %820 = vrot.lane.b32.xlu1 %v818_v5, %s1254_s6 }
 0x4b8   :  { %810 = vrot.lane.b32.xlu0 %v808_v7, %s1254_s6 }
 0x525   :  { %v768_v8 = vpop.permute.xlu1 %767 }
 0x526   :  { %v772_v38 = vadd.f32 %v768_v8, %v1424_v46  ;;  %v766_v9 = vpop.permute.xlu0 %765 }
 0x527   :  { %v771_v11 = vadd.f32 %v766_v9, %v1426_v49 }
 0x528   :  { %v777_v13 = vsel %vm775_vm3, %v772_v38, 0.0 }
 0x529   :  { %v776_v14 = vsel %vm775_vm3, %v771_v11, 0.0  ;;  %v821_v2 = vpop.permute.xlu1 %820 }
 0x52a   :  { %v778_v52 = vadd.f32 %v777_v13, %v776_v14  ;;  %v811_v6 = vpop.permute.xlu0 %810 }
 0x52c   :  { %v779_v27 = vrot.slane %v778_v52, 4 }
 0x52e   :  { %v780_v28 = vadd.f32 %v779_v27, %v778_v52 }
 0x530   :  { %v781_v29 = vrot.slane %v780_v28, 2 }
 0x532   :  { %v782_v41 = vadd.f32 %v781_v29, %v780_v28 }
 0x534   :  { %v783_v30 = vrot.slane %v782_v41, 1 }
 0x536   :  { %v784_v31 = vadd.f32 %v783_v30, %v782_v41 }
 0x538   :  { %v786_v32 = vmul.f32 0.0625, %v784_v31 }
 0x53a   :  { %v787_v50 = vsub.f32 %v771_v11, %v786_v32  ;;  %v788_v60 = vsub.f32 %v772_v38, %v786_v32 }
 0x53c   :  { %v789_v63 = vmul.f32 %v787_v50, %v787_v50  ;;  %v790_v10 = vmul.f32 %v788_v60, %v788_v60 }
 0x53e   :  { %v791_v46 = vsel %vm775_vm3, %v789_v63, 0.0  ;;  %v792_v49 = vsel %vm775_vm3, %v790_v10, 0.0 }
 0x53f   :  { %v793_v16 = vadd.f32 %v792_v49, %v791_v46 }
 0x541   :  { %v794_v40 = vrot.slane %v793_v16, 4 }
 0x543   :  { %v795_v17 = vadd.f32 %v794_v40, %v793_v16 }
 0x545   :  { %v796_v42 = vrot.slane %v795_v17, 2 }
 0x547   :  { %v797_v43 = vadd.f32 %v796_v42, %v795_v17 }
 0x549   :  { %v798_v44 = vrot.slane %v797_v43, 1 }
 0x54b   :  { %v799_v45 = vadd.f32 %v798_v44, %v797_v43 }
 0x54d   :  { %v800_v47 = vmul.f32 0.0625, %v799_v45 }
 0x54f   :  { %v801_v62 = vadd.f32 1e-05, %v800_v47 }
 0x551   :  { %1239 = vrsqrt.f32 %v801_v62 }
 0x55b   :  { %v1240_v0 = vpop.eup %1239 }
 0x55c   :  { %v803_v1 = vmul.f32 %v1240_v0, %v787_v50  ;;  %v804_v15 = vmul.f32 %v1240_v0, %v788_v60 }
 0x55e   :  { %v813_v3 = vmul.f32 %v811_v6, %v803_v1  ;;  %v814_v4 = vmul.f32 %v811_v6, %v804_v15 }
 0x560   :  { %v823_v18 = vadd.f32 %v821_v2, %v813_v3  ;;  %v824_v19 = vadd.f32 %v821_v2, %v814_v4 }
 0x562   :  { %v825_v20 = vsub.f32 0.0, %v823_v18  ;;  %v826_v21 = vsub.f32 0.0, %v824_v19 }
 0x564   :  { %v827_v22 = vmul.f32 1.442695, %v825_v20  ;;  %v829_v23 = vmul.f32 1.442695, %v826_v21 }
 0x566   :  { %1241 = vpow2.f32 %v827_v22 }
 0x567   :  { %1243 = vpow2.f32 %v829_v23 }
 0x570   :  { %v1242_v24 = vpop.eup %1241 }
 0x571   :  { %v1244_v25 = vpop.eup %1243  ;;  %v831_v26 = vadd.f32 1.0, %v1242_v24 }
 0x572   :  { %v832_v33 = vadd.f32 1.0, %v1244_v25 }
 0x573   :  { %1245 = vrcp.f32 %v831_v26 }
 0x574   :  { %1247 = vrcp.f32 %v832_v33 }
 0x57d   :  { %v1246_v34 = vpop.eup %1245 }
 0x57e   :  { %v1248_v35 = vpop.eup %1247  ;;  %v835_v37 = vmul.f32 %v1246_v34, %v823_v18 }
 0x57f   :  { %v836_v39 = vmul.f32 %v1248_v35, %v824_v19 }
 0x580   :  { %839 = vrot.lane.b32.xlu0 %v835_v37, %s1254_s6 }
 0x581   :  { %841 = vrot.lane.b32.xlu1 %v836_v39, %s1254_s6 }
 0x5f2   :  { %v840_v48 = vpop.permute.xlu0 %839 }
 0x5f3   :  { %v842_v51 = vpop.permute.xlu1 %841  ;;  %v845_v54 = vadd.f32 %v1249_v53, %v840_v48 }
 0x5f4   :  { %v846_v55 = vadd.f32 %v842_v51, %v1331_v12 }
 0x5f5   :  { %847 = vst.msk [vmem:[%s1625_s7] sm:$0xff] %vm39_vm0, %v845_v54 }
 0x5f6   :  { %848 = vst.msk [vmem:[%s1625_s7 + $0x8] sm:$0xff] %vm39_vm0, %v846_v55 }

</bundles_post_ra>
